<compile_context>
chip_gen: v7x
topology: tpu7x:2x2x1
jax: 0.10.0
libtpu: 0.0.40
codegen_flags: <defaults>
</compile_context>

<pallas_src>
import functools
import math

import jax
import jax.numpy as jnp
from jax.experimental import pallas as pl
from jax.experimental.pallas import tpu as pltpu


# ------------------------------------ Pallas kernel ----------------------------------------

def _drop_path_kernel(scale_ref, x_ref, o_ref):
    # scale_ref: (TN, 1) per-row keep*scale factor (already in output dtype when float).
    # x_ref/o_ref: (TN, TF) lane-dense tile.  Broadcast-multiply along lanes.
    o_ref[...] = (x_ref[...] * scale_ref[...]).astype(o_ref.dtype)


# --------------------------------------- tiling --------------------------------------------

def _choose_tiles(n, f, itemsize):
    """Pick a (TN, TF) tile: TN multiple of 8 (or == N), TF multiple of 128 (or == F)."""
    # Lane (last) dim: keep a large multiple of 128 for unmasked full-width stores.
    if f > 0 and f % 128 == 0:
        tf = min(f, 4096)
    else:
        tf = f  # full-extent block is always legal, even if not 128-aligned
    tf = max(tf, 1)

    # Sublane dim: aim for ~2 MiB per x tile (fits comfortably under default scoped VMEM
    # with double buffering on v5e/v6e/v7x).
    target_bytes = 2 * 1024 * 1024
    tn = max(1, target_bytes // max(1, tf * itemsize))
    if n < 8:
        tn = n
    else:
        tn = min(max(tn, 8), 512)
        tn = (tn // 8) * 8
        tn = min(tn, (n // 8) * 8)   # keep TN <= N and a multiple of 8; cdiv handles remainder
    return tn, tf


# --------------------------------------- wrapper -------------------------------------------

def drop_path_pallas(x, drop_prob=0.0, *, training=False, scale_by_keep=True, seed=0, key=None):
    """Pallas TPU implementation of drop_path() / DropPath.forward()."""
    if drop_prob is None:
        drop_prob = 0.0
    if drop_prob == 0.0 or not training:
        return x                                                  # identity fast path (same as torch)

    keep_prob = 1.0 - drop_prob
    n = x.shape[0]
    f = int(math.prod(x.shape[1:])) if x.ndim > 1 else 1

    # Per-sample Bernoulli(keep_prob) keep decisions + scaling, computed once in the wrapper
    # (N values -> negligible HBM traffic), passed to the kernel as a (N, 1) column.
    if key is None:
        key = jax.random.PRNGKey(seed)
    keep = jax.random.bernoulli(key, p=keep_prob, shape=(n,))
    scale_val = (1.0 / keep_prob) if (keep_prob > 0.0 and scale_by_keep) else 1.0
    sdtype = x.dtype if jnp.issubdtype(x.dtype, jnp.floating) else jnp.float32
    scale = jnp.where(keep,
                      jnp.asarray(scale_val, dtype=sdtype),
                      jnp.asarray(0.0, dtype=sdtype)).reshape(n, 1)

    x2 = x.reshape(n, f)
    tn, tf = _choose_tiles(n, f, jnp.dtype(x.dtype).itemsize)
    grid = (pl.cdiv(n, tn), pl.cdiv(f, tf))

    out = pl.pallas_call(
        _drop_path_kernel,
        out_shape=jax.ShapeDtypeStruct((n, f), x.dtype),
        grid=grid,
        in_specs=[
            pl.BlockSpec((tn, 1), lambda i, j: (i, 0)),           # per-row scale column
            pl.BlockSpec((tn, tf), lambda i, j: (i, j)),          # x tile
        ],
        out_specs=pl.BlockSpec((tn, tf), lambda i, j: (i, j)),
        compiler_params=pltpu.CompilerParams(
            dimension_semantics=("parallel", "parallel")),
    )(scale, x2)
    return out.reshape(x.shape)


# ----------------------------------------- main --------------------------------------------

if __name__ == "__main__":
    N, C, H, W = 2, 4, 16, 16
    key = jax.random.PRNGKey(0)
    x = jax.random.normal(key, (N, C, H, W), jnp.float32)

    # 1) identity paths (eval mode / drop_prob == 0) must return x unchanged.
    out_eval = drop_path_pallas(x, drop_prob=0.2, training=False)
    out_zero = drop_path_pallas(x, drop_prob=0.0, training=True)
    assert bool(jnp.array_equal(out_eval, x))
    assert bool(jnp.array_equal(out_zero, x))

    # 2) training path with drop_prob > 0 and scale_by_keep=True.
    drop_prob = 0.25
    keep_prob = 1.0 - drop_prob
    out = drop_path_pallas(x, drop_prob=drop_prob, training=True, scale_by_keep=True, seed=0)
    out = jax.block_until_ready(out)
    assert out.shape == x.shape and out.dtype == x.dtype
    assert bool(jnp.all(jnp.isfinite(out)))

    # Structural check: every sample is either fully dropped (all zeros) or x / keep_prob.
    for nidx in range(N):
        kept = bool(jnp.allclose(out[nidx], x[nidx] / keep_prob, atol=1e-5, rtol=1e-5))
        dropped = bool(jnp.allclose(out[nidx], 0.0))
        assert kept or dropped, f"sample {nidx} is neither kept nor dropped"

    # Determinism: same seed -> same per-sample mask.
    out2 = drop_path_pallas(x, drop_prob=drop_prob, training=True, scale_by_keep=True, seed=0)
    assert bool(jnp.array_equal(out, out2))

    # 3) scale_by_keep=False: kept samples are passed through unscaled.
    x2 = jax.random.normal(jax.random.PRNGKey(1), (16, 8, 16), jnp.float32)
    out_ns = drop_path_pallas(x2, drop_prob=0.5, training=True, scale_by_keep=False, seed=7)
    out_ns = jax.block_until_ready(out_ns)
    for nidx in range(x2.shape[0]):
        kept = bool(jnp.allclose(out_ns[nidx], x2[nidx], atol=1e-6, rtol=1e-6))
        dropped = bool(jnp.allclose(out_ns[nidx], 0.0))
        assert kept or dropped, f"sample {nidx} is neither kept nor dropped (no-scale path)"

    # 4) drop_prob == 1.0 must not divide by zero (torch guard) and must drop everything.
    out_all = drop_path_pallas(x, drop_prob=1.0, training=True, scale_by_keep=True, seed=3)
    out_all = jax.block_until_ready(out_all)
    assert bool(jnp.allclose(out_all, 0.0))

    # 5) bf16 path: multiply stays in bf16 (no f32 promotion).
    xb = x.astype(jnp.bfloat16)
    out_b = drop_path_pallas(xb, drop_prob=0.25, training=True, scale_by_keep=True, seed=0)
    out_b = jax.block_until_ready(out_b)
    assert out_b.dtype == jnp.bfloat16 and out_b.shape == xb.shape
    for nidx in range(N):
        kept = bool(jnp.allclose(out_b[nidx].astype(jnp.float32),
                                 (xb[nidx].astype(jnp.float32)) / keep_prob,
                                 atol=2e-2, rtol=2e-2))
        dropped = bool(jnp.allclose(out_b[nidx].astype(jnp.float32), 0.0))
        assert kept or dropped, f"bf16 sample {nidx} is neither kept nor dropped"

    print("KERNEL_OK")
</pallas_src>

<mosaic_0001>
module attributes {stable_mosaic.version = 11 : i64} {
  func.func @_drop_path_kernel(%arg0: i32, %arg1: i32, %arg2: memref<2x1xf32, #tpu.memory_space<vmem>>, %arg3: memref<2x1024xf32, #tpu.memory_space<vmem>>, %arg4: memref<2x1024xf32, #tpu.memory_space<vmem>>) attributes {dimension_semantics = [#tpu.dimension_semantics<parallel>, #tpu.dimension_semantics<parallel>], iteration_bounds = array<i64: 1, 1>, scalar_prefetch = 0 : i64, scratch_operands = 0 : i64, tpu.core_type = #tpu.core_type<tc>, window_params = [{transform_indices = @transform_0, window_bounds = array<i64: 2, 1>}, {transform_indices = @transform_1, window_bounds = array<i64: 2, 1024>}, {transform_indices = @transform_2, window_bounds = array<i64: 2, 1024>}]} {
    %c0 = arith.constant 0 : index
    %c0_0 = arith.constant 0 : index
    %0 = vector.load %arg3[%c0, %c0_0] : memref<2x1024xf32, #tpu.memory_space<vmem>>, vector<2x1024xf32>
    %c0_1 = arith.constant 0 : index
    %c0_2 = arith.constant 0 : index
    %1 = vector.load %arg2[%c0_1, %c0_2] : memref<2x1xf32, #tpu.memory_space<vmem>>, vector<2x1xf32>
    %2 = vector.broadcast %1 : vector<2x1xf32> to vector<2x1024xf32>
    %3 = arith.mulf %0, %2 : vector<2x1024xf32>
    %c0_3 = arith.constant 0 : index
    %c0_4 = arith.constant 0 : index
    %4 = vector.load %arg4[%c0_3, %c0_4] : memref<2x1024xf32, #tpu.memory_space<vmem>>, vector<2x1024xf32>
    tpu.vector_store %arg4[%c0_3, %c0_4], %3 {strides = array<i32>} : memref<2x1024xf32, #tpu.memory_space<vmem>>, vector<2x1024xf32>,
    return
  }
  func.func @transform_0(%arg0: i32, %arg1: i32) -> (i32, i32) {
    %c0_i32 = arith.constant 0 : i32
    %c0_i32_0 = arith.constant 0 : i32
    return %arg0, %c0_i32 : i32, i32
  }
  func.func @transform_1(%arg0: i32, %arg1: i32) -> (i32, i32) {
    %c0_i32 = arith.constant 0 : i32
    return %arg0, %arg1 : i32, i32
  }
  func.func @transform_2(%arg0: i32, %arg1: i32) -> (i32, i32) {
    %c0_i32 = arith.constant 0 : i32
    return %arg0, %arg1 : i32, i32
  }
}

</mosaic_0001>

<bundles_post_ra>
// kernel: tpu_custom_call.1
= control target key start
LH: loop header
LB: loop body
LE: loop exit
PB: predicated region body
PF: predicated region fallthrough
CT: control target
= control target key end

     0   :  { %7 = vsyncpa [#allocation3], 0  ;;  %s157_s0 = inlined_call_operand.vmem [shape: f32[2,1], index: 0, kind: input, shape index: {}]   ;;  %s158_s1 = inlined_call_operand.hbm [shape: f32[2,1024], index: 1, kind: input, shape index: {}]   ;;  %s159_s2 = inlined_call_operand.hbm [shape: f32[2,1024], index: 2, kind: output, shape index: {}]  }
   0x1   :  { %8 = vsyncpa [#allocation4], 0  ;;  %s111_s9 = smov [#allocation2]   ;;  %s63_s13 = scalar_lea.hbm %s158_s1, 256 }
   0x2   :  { %s17_s10 = sshll.u32 %s111_s9, 4  ;;  %p64_p0 = scmp.ne.s32.totalorder %s158_s1, %s63_s13  ;;  %s18_s10 = int_to_ptr.vmem [resolvable:$true] %s17_s10 }
   0x3   :  { %p67_p1 = scmp.lt.u32.totalorder %s63_s13, %s158_s1 }
   0x5   :  { %p69_p2 = pnand %p67_p1, %p64_p0 }
   0x7   :  { %72 = shalt.err (!%p69_p2)
}
   0x8   :  { %s73_s18 = scalar_lea.vmem %s18_s10, 256  ;;  %p78_p4 = scmp.lt.s32.totalorder %s18_s10, %s18_s10 }
   0x9   :  { %p74_p3 = scmp.ne.s32.totalorder %s18_s10, %s73_s18  ;;  %p79_p5 = scmp.lt.s32.totalorder %s73_s18, %s73_s18 }
   0xb   :  { %p80_p6 = por %p79_p5, %p78_p4 }
   0xd   :  { %p81_p7 = pnand %p80_p6, %p74_p3 }
   0xf   :  { %84 = shalt.err (!%p81_p7)
}
  0x10   :  { %20 = dma.hbm_to_vmem [thread:$0]  %s158_s1, 256, %s18_s10, [#allocation3]  }
  0x11   :  { %107 = dma.done.wait [#allocation3], 256  }
  0x12   :  { %108 = vsyncadd [#allocation3], 4294967040  ;;  %v112_v0 = vmov 0   ;;  %v26_v1 = vld [vmem:[%s157_s0] sm:$0x3]  ;;  %v34_v4 = vlaneseq  ;;  %v25_v10 = vld [vmem:[#allocation2 + $0x8] sm:$0xff] }
  0x13   :  { %62 = vset.pattern.permute.xlu0 %v112_v0  ;;  %v113_v2 = vmov 269488144   ;;  %v24_v9 = vld [vmem:[#allocation2] sm:$0xff]  ;;  %s114_s23 = smov [#allocation5]  }
  0x14   :  { %29 = vperm.xlu0 %62, %v26_v1   ;;  %v32_v3 = vunpack.c.l.s4 %v113_v2  ;;  %v35_v6 = vshrl.u32 %v34_v4, 7  ;;  %s49_s1 = sshll.u32 %s114_s23, 4  ;;  %s50_s1 = int_to_ptr.vmem [resolvable:$true] %s49_s1 }
  0x15   :  { %s85_s24 = scalar_lea.vmem %s50_s1, 256  ;;  %p90_p9 = scmp.lt.s32.totalorder %s50_s1, %s50_s1 }
  0x16   :  { %v33_v5 = vunpack.c.0.s8 %v32_v3  ;;  %p86_p8 = scmp.ne.s32.totalorder %s50_s1, %s85_s24  ;;  %p91_p10 = scmp.lt.s32.totalorder %s85_s24, %s85_s24 }
  0x18   :  { %v36_v7 = vsub.s32 %v33_v5, %v35_v6  ;;  %p92_p11 = por %p91_p10, %p90_p9 }
  0x1a   :  { %p93_p12 = pnand %p92_p11, %p86_p8 }
  0x93   :  { %v30_v8 = vpop.permute.xlu0 %29 }
  0x94   :  { %v37_v11 = vrot.slane %v30_v8, %v36_v7 }
  0x96   :  { %v39_v12 = vmul.f32 %v37_v11, %v24_v9  ;;  %v40_v13 = vmul.f32 %v37_v11, %v25_v10 }
  0x98   :  { %41 = vst [vmem:[#allocation5] sm:$0xff] %v39_v12  ;;  %42 = vst [vmem:[#allocation5 + $0x8] sm:$0xff] %v40_v13 }
  0x99   :  { %96 = shalt.err (!%p93_p12)
}
  0x9a   :  { %s97_s26 = scalar_lea.hbm %s159_s2, 256 }
  0x9b   :  { %p98_p13 = scmp.ne.s32.totalorder %s159_s2, %s97_s26  ;;  %p101_p0 = scmp.lt.u32.totalorder %s97_s26, %s159_s2 }
  0x9d   :  { %p103_p1 = pnand %p101_p0, %p98_p13 }
  0x9f   :  { %106 = shalt.err (!%p103_p1)
}
  0xa0   :  { %52 = dma.vmem_to_hbm [thread:$0]  %s50_s1, 256, %s159_s2, [#allocation4]  }
  0xa1   :  { %109 = dma.done.wait [#allocation4], 256  }
  0xa2   :  { %110 = vsyncadd [#allocation4], 4294967040 }
  0xa3   :  { %56 = vsyncpa [#allocation3], 1 }
  0xa4   :  { %57 = vsyncpa [#allocation4], 1 }

</bundles_post_ra>
